<compile_context>
chip_gen: v5e
topology: v5e:2x2
jax: 0.10.0
libtpu: 0.0.40
codegen_flags: <defaults>
</compile_context>

<pallas_src>
import jax
import jax.numpy as jnp
from jax.experimental import pallas as pl
from jax.experimental.pallas import tpu as pltpu

_LANE = 128
_SUBLANE = 8


def _make_partial_sums_kernel(tb, tl, B, L0, row_ragged, col_ragged):
    def kernel(p_ref, t_ref, out_ref):
        # p_ref  : (tb, tl)        predict tile (possibly ragged at the edges)
        # t_ref  : (1, tl)         target tile (resident across inner B sweep)
        # out_ref: (1, 1, 8, 128)  packed partial sums for this grid step
        p = p_ref[...].astype(jnp.float32)
        t = t_ref[...].astype(jnp.float32)
        if col_ragged:
            col0 = pl.program_id(0) * tl
            cmask_t = (jax.lax.broadcasted_iota(jnp.int32, (1, tl), 1) + col0) < L0
            t = jnp.where(cmask_t, t, 0.0)
            cmask_p = (jax.lax.broadcasted_iota(jnp.int32, (tb, tl), 1) + col0) < L0
            p = jnp.where(cmask_p, p, 0.0)
        if row_ragged:
            row0 = pl.program_id(1) * tb
            rmask = (jax.lax.broadcasted_iota(jnp.int32, (tb, 1), 0) + row0) < B
            p = jnp.where(rmask, p, 0.0)
        s_pt = jnp.sum(p * t)          # target sublane-broadcasts over tb rows
        s_pp = jnp.sum(p * p)
        sub = jax.lax.broadcasted_iota(jnp.int32, (_SUBLANE, _LANE), 0)
        out_ref[0, 0] = jnp.where(sub == 0, s_pt,
                                  jnp.where(sub == 1, s_pp, 0.0))
    return kernel


def kernel_matching_loss(predict, target, *, block_budget_bytes=16 * 1024 * 1024):
    assert predict.shape[0] == target.shape[0], \
        f"{predict.shape[0]} vs {target.shape[0]}"
    assert predict.shape[2] == target.shape[1], \
        f"{predict.shape[2]} vs {target.shape[1]}"
    B, C, M = predict.shape
    # PyTorch broadcasting of (B, C, M) * (B, M) requires C == B.
    assert C == B, "predict.shape[1] must equal predict.shape[0] for the broadcast"

    L0 = C * M
    p2 = predict.reshape(B, L0)       # contiguous reshape: no extra HBM copy
    t2 = target.reshape(1, L0)
    p_item = p2.dtype.itemsize
    t_item = t2.dtype.itemsize

    # Row tile: full B when small (no ragged rows); otherwise a multiple of 8.
    tb = B if B <= 64 else 64

    # Lane tile from a VMEM budget that covers the double-buffered predict
    # block plus the sublane-padded, double-buffered target tile.
    per_lane = 2 * tb * p_item + 2 * _SUBLANE * t_item
    tl = max(_LANE, (block_budget_bytes // per_lane) // _LANE * _LANE)
    if tl >= L0:
        if L0 > _LANE:
            # Split into >=2 L-tiles so both v7x TCs get work and DMA pipelines.
            tl = min(L0, ((pl.cdiv(L0, 2) + _LANE - 1) // _LANE) * _LANE)
        else:
            tl = L0
    if tl >= L0:
        tl = L0

    n_l = pl.cdiv(L0, tl)
    n_b = pl.cdiv(B, tb)
    row_ragged = (B % tb) != 0
    col_ragged = (L0 % tl) != 0

    kern = _make_partial_sums_kernel(tb, tl, B, L0, row_ragged, col_ragged)

    vmem_need = (2 * tb * tl * p_item + 2 * _SUBLANE * tl * t_item
                 + 4 * _SUBLANE * _LANE * 4)
    vmem_limit = min(max(32 << 20, int(vmem_need * 2.5)), 48 << 20)

    est_bytes = (B * L0 * p_item + L0 * t_item
                 + n_l * n_b * _SUBLANE * _LANE * 4)

    out = pl.pallas_call(
        kern,
        out_shape=jax.ShapeDtypeStruct((n_l, n_b, _SUBLANE, _LANE), jnp.float32),
        grid_spec=pltpu.PrefetchScalarGridSpec(
            num_scalar_prefetch=0,
            grid=(n_l, n_b),                        # L outer, B inner
            in_specs=[
                pl.BlockSpec((tb, tl), lambda l, b: (b, l)),
                pl.BlockSpec((1, tl), lambda l, b: (0, l)),   # resident over b
            ],
            out_specs=pl.BlockSpec((1, 1, _SUBLANE, _LANE),
                                   lambda l, b: (l, b, 0, 0)),
        ),
        compiler_params=pltpu.CompilerParams(
            dimension_semantics=("parallel", "arbitrary"),
            vmem_limit_bytes=vmem_limit),
        cost_estimate=pl.CostEstimate(
            flops=4 * B * L0, transcendentals=0, bytes_accessed=est_bytes),
    )(p2, t2)

    # Tiny final combine in the wrapper (free relative to the streaming pass).
    s_pt = jnp.sum(out[:, :, 0, 0])
    s_pp = jnp.sum(out[:, :, 1, 0])
    s_tt = jnp.sum(jnp.square(target.astype(jnp.float32)))
    return -s_pt / (jnp.sqrt(s_tt) * jnp.sqrt(s_pp))


def _reference_loss(predict, target):
    predict = predict.astype(jnp.float32)
    target = target.astype(jnp.float32)
    no_pr = jnp.sqrt(jnp.sum(predict * predict))
    no_gt = jnp.sqrt(jnp.sum(target * target))
    return -jnp.sum(predict * target) / (no_gt * no_pr)


if __name__ == "__main__":
    key = jax.random.PRNGKey(0)
    k = jax.random.split(key, 8)

    def check(predict, target):
        loss = kernel_matching_loss(predict, target)
        jax.block_until_ready(loss)
        ref = _reference_loss(predict, target)
        assert jnp.allclose(loss, ref, rtol=1e-5, atol=1e-6), (loss, ref)

    # Case 1: lane-aligned, split into 2 L-tiles (C*M = 256 -> 2 x 128), B = 8.
    B1, M1 = 8, 32
    check(jax.random.normal(k[0], (B1, B1, M1), dtype=jnp.float32),
          jax.random.normal(k[1], (B1, M1), dtype=jnp.float32))

    # Case 2: small full-extent block, non-(8,128)-aligned dims (C*M = 120, B = 6).
    B2, M2 = 6, 20
    check(jax.random.normal(k[2], (B2, B2, M2), dtype=jnp.float32),
          jax.random.normal(k[3], (B2, M2), dtype=jnp.float32))

    # Case 3: ragged L tail (C*M = 320 -> L-tiles of 256, last tile masked).
    B3, M3 = 8, 40
    check(jax.random.normal(k[4], (B3, B3, M3), dtype=jnp.float32),
          jax.random.normal(k[5], (B3, M3), dtype=jnp.float32))

    # Case 4: ragged rows AND ragged L tail (B = 72 > row tile 64, C*M = 144).
    B4, M4 = 72, 2
    check(jax.random.normal(k[6], (B4, B4, M4), dtype=jnp.float32),
          jax.random.normal(k[7], (B4, M4), dtype=jnp.float32))

    print("KERNEL_OK")
</pallas_src>

<mosaic_0001>
module attributes {stable_mosaic.version = 11 : i64} {
  func.func @kernel(%arg0: i32, %arg1: i32, %arg2: memref<8x128xf32, #tpu.memory_space<vmem>>, %arg3: memref<1x128xf32, #tpu.memory_space<vmem>>, %arg4: memref<1x1x8x128xf32, #tpu.memory_space<vmem>>) attributes {dimension_semantics = [#tpu.dimension_semantics<parallel>, #tpu.dimension_semantics<arbitrary>], iteration_bounds = array<i64: 2, 1>, scalar_prefetch = 0 : i64, scratch_operands = 0 : i64, tpu.core_type = #tpu.core_type<tc>, window_params = [{transform_indices = @transform_0, window_bounds = array<i64: 8, 128>}, {transform_indices = @transform_1, window_bounds = array<i64: 1, 128>}, {transform_indices = @transform_2, window_bounds = array<i64: 1, 1, 8, 128>}]} {
    %c0 = arith.constant 0 : index
    %c0_0 = arith.constant 0 : index
    %0 = vector.load %arg2[%c0, %c0_0] : memref<8x128xf32, #tpu.memory_space<vmem>>, vector<8x128xf32>
    %c0_1 = arith.constant 0 : index
    %c0_2 = arith.constant 0 : index
    %1 = vector.load %arg3[%c0_1, %c0_2] : memref<1x128xf32, #tpu.memory_space<vmem>>, vector<1x128xf32>
    %2 = vector.broadcast %1 : vector<1x128xf32> to vector<8x128xf32>
    %3 = arith.mulf %0, %2 : vector<8x128xf32>
    %4 = vector.shape_cast %3 : vector<8x128xf32> to vector<1x8x128xf32>
    %cst = arith.constant dense<0.000000e+00> : vector<1xf32>
    %5 = vector.multi_reduction <add>, %4, %cst [1, 2] : vector<1x8x128xf32> to vector<1xf32>
    %6 = vector.shape_cast %5 : vector<1xf32> to vector<1x1x1xf32>
    %7 = vector.extract %6[0, 0, 0] : f32 from vector<1x1x1xf32>
    %8 = arith.mulf %0, %0 : vector<8x128xf32>
    %9 = vector.shape_cast %8 : vector<8x128xf32> to vector<1x8x128xf32>
    %cst_3 = arith.constant dense<0.000000e+00> : vector<1xf32>
    %10 = vector.multi_reduction <add>, %9, %cst_3 [1, 2] : vector<1x8x128xf32> to vector<1xf32>
    %11 = vector.shape_cast %10 : vector<1xf32> to vector<1x1x1xf32>
    %12 = vector.extract %11[0, 0, 0] : f32 from vector<1x1x1xf32>
    %13 = tpu.iota {dimensions = array<i32: 0>} : vector<8x128xi32>
    %c0_i32 = arith.constant 0 : i32
    %14 = vector.broadcast %c0_i32 : i32 to vector<8x128xi32>
    %15 = arith.cmpi eq, %13, %14 : vector<8x128xi32>
    %c1_i32 = arith.constant 1 : i32
    %16 = vector.broadcast %c1_i32 : i32 to vector<8x128xi32>
    %17 = arith.cmpi eq, %13, %16 : vector<8x128xi32>
    %cst_4 = arith.constant 0.000000e+00 : f32
    %18 = vector.broadcast %12 : f32 to vector<8x128xf32>
    %19 = vector.broadcast %cst_4 : f32 to vector<8x128xf32>
    %20 = arith.select %17, %18, %19 : vector<8x128xi1>, vector<8x128xf32>
    %21 = vector.broadcast %7 : f32 to vector<8x128xf32>
    %22 = arith.select %15, %21, %20 : vector<8x128xi1>, vector<8x128xf32>
    %c0_5 = arith.constant 0 : index
    %c0_6 = arith.constant 0 : index
    %c0_7 = arith.constant 0 : index
    %c0_8 = arith.constant 0 : index
    %23 = vector.load %arg4[%c0_5, %c0_6, %c0_7, %c0_8] : memref<1x1x8x128xf32, #tpu.memory_space<vmem>>, vector<1x1x8x128xf32>
    %24 = vector.shape_cast %23 : vector<1x1x8x128xf32> to vector<8x128xf32>
    %25 = vector.shape_cast %22 : vector<8x128xf32> to vector<1x1x8x128xf32>
    tpu.vector_store %arg4[%c0_5, %c0_6, %c0_7, %c0_8], %25 {strides = array<i32>} : memref<1x1x8x128xf32, #tpu.memory_space<vmem>>, vector<1x1x8x128xf32>,
    return
  }
  func.func @transform_0(%arg0: i32, %arg1: i32) -> (i32, i32) {
    %c0_i32 = arith.constant 0 : i32
    return %arg1, %arg0 : i32, i32
  }
  func.func @transform_1(%arg0: i32, %arg1: i32) -> (i32, i32) {
    %c0_i32 = arith.constant 0 : i32
    %c0_i32_0 = arith.constant 0 : i32
    return %c0_i32, %arg0 : i32, i32
  }
  func.func @transform_2(%arg0: i32, %arg1: i32) -> (i32, i32, i32, i32) {
    %c0_i32 = arith.constant 0 : i32
    %c0_i32_0 = arith.constant 0 : i32
    %c0_i32_1 = arith.constant 0 : i32
    return %arg0, %arg1, %c0_i32, %c0_i32_0 : i32, i32, i32, i32
  }
}

</mosaic_0001>

<bundles_post_ra>
// kernel: tpu_custom_call.1
= control target key start
LH: loop header
LB: loop body
LE: loop exit
PB: predicated region body
PF: predicated region fallthrough
CT: control target
= control target key end

     0   :  { %7 = vsyncpa [#allocation3], 0  ;;  %s747_s0 = inlined_call_operand.hbm [shape: f32[8,256], index: 0, kind: input, shape index: {}]   ;;  %s748_s1 = inlined_call_operand.hbm [shape: f32[1,256], index: 1, kind: input, shape index: {}]   ;;  %s749_s2 = inlined_call_operand.hbm [shape: f32[2,1,8,128], index: 2, kind: output, shape index: {}]  }
   0x1   :  { %9 = vsyncpa [#allocation3 + $0x1], 0 }
   0x2   :  { %10 = vsyncpa [#allocation6], 0 }
   0x3   :  { %12 = vsyncpa [#allocation6 + $0x1], 0 }
   0x4   :  { %13 = vsyncpa [#allocation4], 0 }
   0x5   :  { %15 = vsyncpa [#allocation4 + $0x1], 0  ;;  %s613_s9 = smov 0   ;;  %s615_s10 = smov 0  }
   0x6   :  { %s617_s11 = smov 0   ;;  %s619_s12 = smov 0  }
   0x7   :  { %s621_s13 = smov 0   ;;  %s623_s14 = smov 0  }
   0x8 LB: > { %s365_s15 = sadd.s32 4294967295, %s596_s14   ;;  %s366_s16 = sadd.s32 4294967294, %s596_s14   ;;  %s596_s14 = sphi %s623_s14, %s21_s14   ;;  %s592_s13 = sphi %s621_s13, %s758_s13   ;;  %s588_s12 = sphi %s619_s12, %s757_s12   ;;  %s584_s11 = sphi %s617_s11, %s756_s11   ;;  %s580_s10 = sphi %s615_s10, %s755_s10   ;;  %s576_s9 = sphi %s613_s9, %s754_s9  }
   0x9   : > { %s33_s17 = sadd.s32 1, %s592_s13  ;;  %s42_s18 = sadd.s32 1, %s584_s11 }
   0xa   : > { %p35_p0 = scmp.ge.s32.totalorder %s33_s17, 2  ;;  %p49_p1 = scmp.ne.s32.totalorder %s584_s11, %s580_s10 }
   0xb   : > { %p50_p2 = scmp.eq.s32.totalorder %s596_s14, 0  ;;  %p55_p3 = scmp.ne.s32.totalorder %s580_s10, %s576_s9 }
   0xc   : > { %s760_s17 = smov (%p35_p0, %s33_s17), 0  ;;  %p56_p5 = scmp.eq.s32.totalorder %s365_s15, 0 }
   0xd   : > { %p654_p4 = por %p50_p2, %p49_p1  ;;  %s38_s20 = ssub.s32 %s592_s13, %s760_s17 }
   0xe   : > { %p107_p6 = scmp.eq.s32.totalorder %s365_s15, 1  ;;  %p40_p7 = scmp.eq.s32.totalorder %s38_s20, 0 }
   0xf   : > { %p660_p8 = por %p56_p5, %p55_p3  ;;  %p113_p10 = scmp.eq.s32.totalorder %s366_s16, 1 }
  0x10   : > { %p664_p9 = por %p107_p6, %p49_p1  ;;  %p368_p12 = scmp.ge.s32.totalorder %s596_s14, 2 }
  0x11   : > { %s669_s23 = scalar_select %p40_p7, %s584_s11, %s42_s18  }
  0x12   : > { %p671_p11 = por %p113_p10, %p55_p3  ;;  %p399_p13 = scmp.lt.s32.totalorder %s596_s14, 2 }
  0x13   : > { %s133_s25 = sand.u32 1, %s584_s11   ;;  %s370_s27 = sshll.u32 %s592_s13, 3 }
  0x14   : > { %s369_s26 = sshll.u32 %s133_s25, 3  ;;  %s143_s30 = scalar_lea.hbm %s747_s0, %s370_s27 }
  0x15   : > { %s137_s3 = scalar_lea.vmem [#allocation2], %s369_s26  ;;  %s145_s5 = sshll.u32 %s143_s30, 4  ;;  %s146_s5 = int_to_ptr.hbm [resolvable:$true] %s145_s5 }
  0x16   : > { %s147_s4 = sshll.u32 %s137_s3, 4  ;;  %p389_p0 = pnand %p399_p13, %p654_p4  ;;  %s148_s4 = int_to_ptr.vmem [resolvable:$true] %s147_s4 }
  0x17   : > { %p371_p1 = scmp.ge.s32.totalorder %s596_s14, 1  ;;  %p169_p2 = scmp.lt.s32.totalorder %s596_s14, 3 }
  0x18   : > { %s134_s6 = scalar_lea.sflag [#allocation3], %s133_s25  ;;  %s160_s15 = scalar_lea.hbm %s748_s1, %s592_s13 }
  0x19   : > { %391 = dma.hbm_to_vmem [thread:$0]  (!%p389_p0), %s146_s5, 128, %s148_s4, %s134_s6  }
  0x1a   : > { %p170_p3 = pnand %p371_p1, %p169_p2  ;;  %s157_s16 = scalar_lea.vmem [#allocation5], %s133_s25 }
  0x1b   : > { %s164_s18 = sshll.u32 %s157_s16, 4  ;;  %s162_s20 = sshll.u32 %s160_s15, 4  ;;  %s165_s18 = int_to_ptr.vmem [resolvable:$true] %s164_s18  ;;  %s163_s20 = int_to_ptr.hbm [resolvable:$true] %s162_s20 }
  0x1c   : > { %s155_s26 = scalar_lea.sflag [#allocation6], %s133_s25  ;;  %173 = sbr.rel (%p170_p3) target bundleno = 232 (0xe8), region = 28 }
  0x1d   : > { %394 = dma.hbm_to_vmem [thread:$0]  (!%p389_p0), %s163_s20, 16, %s165_s18, %s155_s26  }
  0x1e   : > { %s691_s19 = sand.u32 (!%p170_p3), 1, %s580_s10  }
  0x1f   : > { %s372_s27 = sshll.u32 (!%p170_p3), %s691_s19, 3  ;;  %s176_s28 = scalar_lea.sflag (!%p170_p3), [#allocation3], %s691_s19 }
  0x20   : > { %s179_s29 = scalar_lea.vmem (!%p170_p3), [#allocation2], %s372_s27 }
  0x21   : > { %563 = dma.done.wait (%p660_p8), %s176_s28, 128  }
  0x22   : > { %565 = vsyncadd (%p660_p8), %s176_s28, 4294967168  ;;  %s186_s25 = scalar_lea.sflag [#allocation6], %s691_s19  ;;  %s188_s30 = scalar_lea.vmem [#allocation5], %s691_s19 }
  0x23   : > { %567 = dma.done.wait (%p660_p8), %s186_s25, 16  }
  0x24   : > { %569 = vsyncadd (%p660_p8), %s186_s25, 4294967280  ;;  %v214_v0 = vld [vmem:[%s179_s29] sm:$0xff]  ;;  %v239_v18 = vlaneseq  ;;  %s375_s21 = sshll.u32 %s588_s12, 3  ;;  %s213_s6 = scalar_lea.vmem [#allocation7], %s372_s27 }
  0x25   : > { %v449_v1 = vld [vmem:[%s188_s30] ss:$0 sm:$0xff]  ;;  %v229_v3 = vmul.f32 %v214_v0, %v214_v0  ;;  %s260_s5 = scalar_lea.hbm %s749_s2, %s375_s21  ;;  %s262_s7 = sshll.u32 %s213_s6, 4  ;;  %s263_s7 = int_to_ptr.vmem [resolvable:$true] %s262_s7 }
  0x26   : > { %v219_v2 = vmul.f32 %v449_v1, %v214_v0  ;;  %v240_v19 = vshrl.u32 %v239_v18, 7  ;;  %s264_s15 = sshll.u32 %s260_s5, 4  ;;  %s249_s12 = scalar_lea.sflag [#allocation4], %s691_s19  ;;  %s265_s15 = int_to_ptr.hbm [resolvable:$true] %s264_s15 }
  0x27   : > { %s524_s18 = sshra.s32 %s265_s15, 4  ;;  %s530_s28 = scalar_lea.hbm %s749_s2, 16  ;;  %s525_s18 = int_to_ptr.hbm [resolvable:$true] %s524_s18 }
  0x28   : > { %220 = vadd.xlane.f32.xlu0 %v219_v2  ;;  %vm242_vm0 = vcmp.eq.s32.totalorder %v240_v19, 1  ;;  %vm241_vm1 = vcmp.eq.s32.totalorder %v240_v19, 0  ;;  %s526_s20 = scalar_lea.hbm %s525_s18, 8  ;;  %p531_p7 = scmp.lt.s32.totalorder %s525_s18, %s749_s2 }
  0x29   : > { %p527_p4 = scmp.ne.s32.totalorder %s525_s18, %s526_s20  ;;  %p532_p8 = scmp.lt.s32.totalorder %s530_s28, %s526_s20 }
  0x2b   : > { %p528_p5 = pnand %p527_p4, %p664_p9  ;;  %p533_p10 = por %p532_p8, %p531_p7 }
  0x2d   : > { %p529_p6 = pneg %p528_p5 }
  0x2f   : > { %p534_p13 = pnand %p533_p10, %p529_p6 }
  0x30   : > { %230 = vadd.xlane.f32.xlu0 %v229_v3 }
  0x9b   : > { %v221_v4 = vpop.xlane.xlu0 %220 }
  0x9c   : > { %v222_v5 = vrot.slane %v221_v4, 4 }
  0x9e   : > { %v223_v6 = vadd.f32 %v222_v5, %v221_v4 }
  0xa0   : > { %v224_v7 = vrot.slane %v223_v6, 2 }
  0xa2   : > { %v225_v8 = vadd.f32 %v224_v7, %v223_v6 }
  0xa3   : > { %v231_v9 = vpop.xlane.xlu0 %230 }
  0xa4   : > { %v232_v10 = vrot.slane %v231_v9, 4  ;;  %v226_v11 = vrot.slane %v225_v8, 1 }
  0xa6   : > { %v233_v12 = vadd.f32 %v232_v10, %v231_v9  ;;  %v227_v13 = vadd.f32 %v226_v11, %v225_v8 }
  0xa8   : > { %v234_v14 = vrot.slane %v233_v12, 2  ;;  %378 = vpush %v227_v13 }
  0xaa   : > { %v235_v15 = vadd.f32 %v234_v14, %v233_v12 }
  0xac   : > { %v236_v16 = vrot.slane %v235_v15, 1 }
  0xae   : > { %v237_v17 = vadd.f32 %v236_v16, %v235_v15 }
  0xb0   : > { %380 = vpush %v237_v17 }
  0xd9   : > { %s379_s8 = spop %378 }
  0xda   : > { %v245_v21 = vstv %s379_s8 }
  0xe1   : > { %s381_s16 = spop %380 }
  0xe2   : > { %v243_v20 = vstv %s381_s16 }
  0xe3   : > { %v244_v22 = vsel %vm242_vm0, %v243_v20, 0.0 }
  0xe4   : > { %v246_v23 = vsel %vm241_vm1, %v245_v21, %v244_v22 }
  0xe5   : > { %247 = vst [vmem:[%s213_s6] sm:$0xff] %v246_v23 }
  0xe6   : > { %537 = shalt.err (!%p534_p13)
}
  0xe7   : > { %386 = dma.vmem_to_hbm [thread:$0]  (%p664_p9), %s263_s7, 128, %s265_s15, %s249_s12  }
  0xe8 PF: > { %s276_s19 = sand.u32 1, %s576_s9   ;;  %p396_p0 = pnand %p368_p12, %p671_p11 }
  0xe9   : > { %s277_s30 = scalar_lea.sflag [#allocation4], %s276_s19 }
  0xea   : > { %p397_p1 = pneg %p396_p0 }
  0xec   : > { %571 = dma.done.wait (%p397_p1), %s277_s30, 128  }
  0xed   : > { %573 = vsyncadd (%p397_p1), %s277_s30, 4294967168  ;;  %s21_s14 = sadd.s32 1, %s596_s14   ;;  %s754_s9 = smov %s580_s10 }
  0xee   : > { %p18_p2 = scmp.ge.s32.totalorder %s21_s14, 4   ;;  %s755_s10 = smov %s584_s11 }
  0xef   : > { %s756_s11 = smov %s669_s23  ;;  %s757_s12 = smov %s592_s13 }
  0xf0   : > { %s758_s13 = smov %s760_s17  ;;  %20 = sbr.rel (!%p18_p2) target bundleno = 8 (0x8), region = 86 }
  0xf5   :  { %283 = vsyncpa [#allocation3], 1 }
  0xf6   :  { %285 = vsyncpa [#allocation3 + $0x1], 1 }
  0xf7   :  { %286 = vsyncpa [#allocation6], 1 }
  0xf8   :  { %288 = vsyncpa [#allocation6 + $0x1], 1 }
  0xf9   :  { %289 = vsyncpa [#allocation4], 1 }
  0xfa   :  { %291 = vsyncpa [#allocation4 + $0x1], 1 }

</bundles_post_ra>
